<compile_context>
chip_gen: v6e
topology: v6e:2x2x1
jax: 0.10.0
libtpu: 0.0.40
codegen_flags: <defaults>
</compile_context>

<pallas_src>
import jax
import jax.numpy as jnp
from jax.experimental import pallas as pl
from jax.experimental.pallas import tpu as pltpu

_LANES = 128


def _round_up(x, m):
    return ((x + m - 1) // m) * m


def _vmem_capacity_bytes(default=64 << 20):
    # Conservative default (v7x per-TensorCore VMEM) if the query fails.
    try:
        cap = getattr(pltpu.get_tpu_info(), "vmem_capacity_bytes", None)
        if cap:
            return int(cap)
    except Exception:
        pass
    return default


def _make_dice_partial_kernel(*, R, S, tile, steps_per_core, n_tiles,
                              total_tiles, row_group,
                              max_unrolled_chunks=16, fori_unroll=8):
    """Build the (core, spatial-tile) partial-sum kernel for fixed statics."""
    n_chunks = tile // _LANES
    ragged = (S % tile) != 0
    # Tiles with index >= first_masked need lane masking (partial tail tile,
    # or the duplicate extra tile introduced by an uneven 2-core split).
    first_masked = (S // tile) if ragged else n_tiles
    any_masked = ragged or (total_tiles > n_tiles)
    n_groups = -(-R // row_group)

    def kernel(x_ref, t_ref, inter_ref, denom_ref):
        p = pl.program_id(0)
        s = pl.program_id(1)
        ti = p * steps_per_core + s            # global spatial-tile index

        @pl.when(s == 0)
        def _init():
            inter_ref[...] = jnp.zeros_like(inter_ref)
            denom_ref[...] = jnp.zeros_like(denom_ref)

        def accumulate(masked):
            tile_base = ti * tile              # global lane offset of this tile
            lane_ids = (jax.lax.broadcasted_iota(jnp.int32, (1, _LANES), 1)
                        if masked else None)

            def chunk(xk, tk, start):
                xk = xk.astype(jnp.float32)
                tk = tk.astype(jnp.float32)
                if masked:
                    m = (lane_ids + start) < S
                    xk = jnp.where(m, xk, 0.0)   # select: garbage lanes -> 0
                    tk = jnp.where(m, tk, 0.0)
                return xk * tk, xk + tk

            for g in range(n_groups):
                r0 = g * row_group
                r1 = min(R, r0 + row_group)
                rows = slice(r0, r1)
                nrows = r1 - r0
                zeros = jnp.zeros((nrows, _LANES), jnp.float32)

                if n_chunks <= max_unrolled_chunks:
                    i_acc, d_acc = zeros, zeros
                    for k in range(n_chunks):          # static slices: free views
                        cols = slice(k * _LANES, (k + 1) * _LANES)
                        ic, dc = chunk(x_ref[rows, cols], t_ref[rows, cols],
                                       tile_base + k * _LANES)
                        i_acc = i_acc + ic
                        d_acc = d_acc + dc
                else:
                    def body(k, carry):
                        ia, da = carry
                        off = pl.multiple_of(k * _LANES, _LANES)
                        ic, dc = chunk(x_ref[rows, pl.ds(off, _LANES)],
                                       t_ref[rows, pl.ds(off, _LANES)],
                                       tile_base + off)
                        return ia + ic, da + dc
                    i_acc, d_acc = jax.lax.fori_loop(
                        0, n_chunks, body, (zeros, zeros),
                        unroll=min(fori_unroll, n_chunks))

                # Single accumulator RMW per row-group per tile: the chunk loop
                # above is pure input loads + VPU, so the store slot stays idle.
                inter_ref[rows, :] += i_acc
                denom_ref[rows, :] += d_acc

        if not any_masked:
            accumulate(False)
        elif first_masked == 0:
            accumulate(True)
        else:
            @pl.when(ti < first_masked)
            def _fast():
                accumulate(False)

            @pl.when(ti >= first_masked)
            def _tail():
                accumulate(True)

    return kernel


def multiclass_dice_loss(inputs, target, weights=None, *, tile_lanes=None):
    """Multi-class soft Dice loss (semantics of PyTorch MulticlassDiceLoss).

    inputs, target : (N, C, H, W) arrays (target one-hot encoded).
    weights        : optional length-C per-class weights.
    tile_lanes     : optional spatial tile override (lanes), mainly for tests.
    Returns a float32 scalar.
    """
    if inputs.shape != target.shape:
        raise ValueError("inputs and target must share the (N, C, H, W) shape.")
    N, C = inputs.shape[0], inputs.shape[1]
    if C < 2:
        raise ValueError("MulticlassDiceLoss requires at least 2 classes.")
    S = 1
    for d in inputs.shape[2:]:
        S *= d
    R = N * C
    # TODO(synk): tile N*C as a third grid axis if R*tile blocks / R*128
    # accumulators ever outgrow VMEM (only relevant for N*C in the tens of
    # thousands).

    x = inputs.reshape(R, S)     # contiguous NCHW -> (N*C, H*W): free reshape
    t = target.reshape(R, S)
    x_item = jnp.dtype(x.dtype).itemsize
    t_item = jnp.dtype(t.dtype).itemsize
    per_lane_bytes = R * (x_item + t_item)      # both inputs, one lane column

    # ---- generation-aware VMEM budget & byte-targeted spatial tile ---------
    vmem_cap = _vmem_capacity_bytes()                      # 64 MiB on v7x, 128 on v5e/v6e
    vmem_ceiling = max(vmem_cap - (8 << 20), 16 << 20)     # compiler-scratch headroom
    input_budget = (vmem_ceiling * 7) // 10                # 2 inputs x 2 pipeline buffers
    per_buffer_budget = min(input_budget // 2, 32 << 20)   # both inputs, one buffer

    S_pad = _round_up(S, _LANES)
    max_tile = max(_LANES,
                   (per_buffer_budget // per_lane_bytes) // _LANES * _LANES)
    tile = max_tile if tile_lanes is None else _round_up(max(tile_lanes, 1), _LANES)
    tile = max(_LANES, min(tile, max_tile, S_pad))

    n_tiles = -(-S // tile)
    split = 2 if n_tiles >= 2 else 1           # engage both v7x TensorCores
    steps_per_core = -(-n_tiles // split)
    total_tiles = split * steps_per_core       # may exceed n_tiles by one (masked)

    row_group = max(8, 32 // max(1, min(x_item, t_item)))  # 8 f32 / 16 bf16 rows

    kernel = _make_dice_partial_kernel(
        R=R, S=S, tile=tile, steps_per_core=steps_per_core, n_tiles=n_tiles,
        total_tiles=total_tiles, row_group=row_group)

    if total_tiles == n_tiles:
        in_idx = lambda p, s: (0, p * steps_per_core + s)
    else:
        last = n_tiles - 1                     # clamp the duplicate extra tile
        in_idx = lambda p, s: (0, jnp.minimum(p * steps_per_core + s, last))

    x_spec = pl.BlockSpec((R, tile), in_idx)
    t_spec = pl.BlockSpec((R, tile), in_idx)
    # NOTE: sweep pipeline_mode=pl.Buffered(3) on x_spec/t_spec if xprof shows
    # exposed DMA at grid-step boundaries; default double-buffering kept here.
    part_spec = pl.BlockSpec((None, R, _LANES), lambda p, s: (p, 0, 0))
    part_shape = jax.ShapeDtypeStruct((split, R, _LANES), jnp.float32)

    block_bytes = R * tile * (x_item + t_item)             # both inputs, one buffer
    acc_bytes = 2 * 2 * _round_up(R, 8) * _LANES * 4       # 2 outputs, 2 buffers
    vmem_limit = int(min(vmem_ceiling,
                         max(2 * block_bytes + acc_bytes + (8 << 20), 16 << 20)))

    inter_p, denom_p = pl.pallas_call(
        kernel,
        out_shape=(part_shape, part_shape),
        grid_spec=pltpu.PrefetchScalarGridSpec(
            num_scalar_prefetch=0,
            grid=(split, steps_per_core),
            in_specs=[x_spec, t_spec],
            out_specs=[part_spec, part_spec],
        ),
        compiler_params=pltpu.CompilerParams(
            dimension_semantics=("parallel", "arbitrary"),
            vmem_limit_bytes=vmem_limit),
    )(x, t)

    # ---- tiny O(N*C) epilogue in plain JAX ----------------------------------
    inter = jnp.sum(inter_p, axis=(0, 2)).reshape(N, C)
    denom = jnp.sum(denom_p, axis=(0, 2)).reshape(N, C)

    smooth = jnp.float32(1.0)
    dice_nc = 2.0 * (inter + smooth) / (denom + smooth)     # (N, C) per-sample dice
    per_class = -jnp.sum(dice_nc, axis=0) / jnp.float32(N)  # (C,)
    if weights is not None:
        per_class = per_class * jnp.asarray(weights, jnp.float32)
    return jnp.sum(per_class[1:]) / jnp.float32(C - 1)      # skip background class 0


def _reference_loss(inputs, target, weights=None):
    """Pure-JAX transcription of the PyTorch MulticlassDiceLoss.forward."""
    N, C = inputs.shape[0], inputs.shape[1]
    xi = inputs.reshape(N, C, -1).astype(jnp.float32)
    ti = target.reshape(N, C, -1).astype(jnp.float32)
    total = jnp.float32(0.0)
    for i in range(1, C):
        inter = jnp.sum(xi[:, i] * ti[:, i], axis=1)
        l = 2.0 * (inter + 1.0) / (
            jnp.sum(xi[:, i], axis=1) + jnp.sum(ti[:, i], axis=1) + 1.0)
        l = -jnp.sum(l) / N
        if weights is not None:
            l = l * weights[i]
        total = total + l
    return total / (C - 1)


if __name__ == "__main__":
    key = jax.random.PRNGKey(0)

    def make_case(k, N, C, H, W):
        k1, k2 = jax.random.split(k)
        logits = jax.random.normal(k1, (N, C, H, W), jnp.float32)
        probs = jax.nn.softmax(logits, axis=1)                    # "predictions"
        labels = jax.random.randint(k2, (N, H, W), 0, C)
        onehot = jnp.transpose(jax.nn.one_hot(labels, C, dtype=jnp.float32),
                               (0, 3, 1, 2))                      # NCHW one-hot
        return probs, onehot

    k0, k1, k2 = jax.random.split(key, 3)

    # Case 1: lane-aligned spatial extent -> unmasked fast path.
    x1, t1 = make_case(k0, 2, 4, 16, 16)
    loss1 = jax.block_until_ready(multiclass_dice_loss(x1, t1))
    ref1 = _reference_loss(x1, t1)
    assert jnp.allclose(loss1, ref1, rtol=1e-5, atol=1e-5), (loss1, ref1)

    # Case 2: per-class weights + ragged spatial extent -> in-kernel tail mask
    # (replaces the old wrapper-side jnp.pad).
    x2, t2 = make_case(k1, 2, 3, 5, 7)
    w = jnp.array([0.0, 0.5, 1.5], jnp.float32)
    loss2 = jax.block_until_ready(multiclass_dice_loss(x2, t2, weights=w))
    ref2 = _reference_loss(x2, t2, weights=w)
    assert jnp.allclose(loss2, ref2, rtol=1e-5, atol=1e-5), (loss2, ref2)

    # Case 3: odd multi-tile spatial reduction -> 2-way "parallel" split with a
    # clamped index_map and a fully-masked extra tile (v7x 2-TensorCore path).
    x3, t3 = make_case(k2, 2, 4, 48, 48)
    loss3 = jax.block_until_ready(multiclass_dice_loss(x3, t3, tile_lanes=256))
    ref3 = _reference_loss(x3, t3)
    assert jnp.allclose(loss3, ref3, rtol=1e-5, atol=1e-5), (loss3, ref3)

    print("KERNEL_OK")
</pallas_src>

<mosaic_0001>
module attributes {stable_mosaic.version = 11 : i64} {
  func.func @kernel(%arg0: i32, %arg1: i32, %arg2: memref<8x256xf32, #tpu.memory_space<vmem>>, %arg3: memref<8x256xf32, #tpu.memory_space<vmem>>, %arg4: memref<1x8x128xf32, #tpu.memory_space<vmem>>, %arg5: memref<1x8x128xf32, #tpu.memory_space<vmem>>) attributes {dimension_semantics = [#tpu.dimension_semantics<parallel>, #tpu.dimension_semantics<arbitrary>], iteration_bounds = array<i64: 1, 1>, scalar_prefetch = 0 : i64, scratch_operands = 0 : i64, tpu.core_type = #tpu.core_type<tc>, window_params = [{transform_indices = @transform_0, window_bounds = array<i64: 8, 256>}, {transform_indices = @transform_1, window_bounds = array<i64: 8, 256>}, {transform_indices = @transform_2, window_bounds = array<i64: 1, 8, 128>}, {transform_indices = @transform_3, window_bounds = array<i64: 1, 8, 128>}]} {
    %c0_i32 = arith.constant 0 : i32
    %0 = arith.cmpi eq, %arg1, %c0_i32 : i32
    %1 = arith.extui %0 : i1 to i32
    %c0_i32_0 = arith.constant 0 : i32
    %2 = arith.cmpi ne, %1, %c0_i32_0 : i32
    scf.if %2 {
      %cst_19 = arith.constant 0.000000e+00 : f32
      %28 = vector.broadcast %cst_19 : f32 to vector<8x128xf32>
      %c0_20 = arith.constant 0 : index
      %c0_21 = arith.constant 0 : index
      %c0_22 = arith.constant 0 : index
      %29 = vector.load %arg4[%c0_20, %c0_21, %c0_22] : memref<1x8x128xf32, #tpu.memory_space<vmem>>, vector<1x8x128xf32>
      %30 = vector.shape_cast %29 : vector<1x8x128xf32> to vector<8x128xf32>
      %31 = vector.shape_cast %28 : vector<8x128xf32> to vector<1x8x128xf32>
      tpu.vector_store %arg4[%c0_20, %c0_21, %c0_22], %31 {strides = array<i32>} : memref<1x8x128xf32, #tpu.memory_space<vmem>>, vector<1x8x128xf32>,
      %cst_23 = arith.constant 0.000000e+00 : f32
      %32 = vector.broadcast %cst_23 : f32 to vector<8x128xf32>
      %c0_24 = arith.constant 0 : index
      %c0_25 = arith.constant 0 : index
      %c0_26 = arith.constant 0 : index
      %33 = vector.load %arg5[%c0_24, %c0_25, %c0_26] : memref<1x8x128xf32, #tpu.memory_space<vmem>>, vector<1x8x128xf32>
      %34 = vector.shape_cast %33 : vector<1x8x128xf32> to vector<8x128xf32>
      %35 = vector.shape_cast %32 : vector<8x128xf32> to vector<1x8x128xf32>
      tpu.vector_store %arg5[%c0_24, %c0_25, %c0_26], %35 {strides = array<i32>} : memref<1x8x128xf32, #tpu.memory_space<vmem>>, vector<1x8x128xf32>,
    } else {
    }
    %cst = arith.constant 0.000000e+00 : f32
    %3 = vector.broadcast %cst : f32 to vector<8x128xf32>
    %c0 = arith.constant 0 : index
    %c0_1 = arith.constant 0 : index
    %4 = vector.load %arg2[%c0, %c0_1] : memref<8x256xf32, #tpu.memory_space<vmem>>, vector<8x128xf32>
    %c0_2 = arith.constant 0 : index
    %c0_3 = arith.constant 0 : index
    %5 = vector.load %arg3[%c0_2, %c0_3] : memref<8x256xf32, #tpu.memory_space<vmem>>, vector<8x128xf32>
    %6 = arith.mulf %4, %5 : vector<8x128xf32>
    %7 = arith.addf %4, %5 : vector<8x128xf32>
    %8 = arith.addf %3, %6 : vector<8x128xf32>
    %9 = arith.addf %3, %7 : vector<8x128xf32>
    %c0_4 = arith.constant 0 : index
    %c128 = arith.constant 128 : index
    %10 = vector.load %arg2[%c0_4, %c128] : memref<8x256xf32, #tpu.memory_space<vmem>>, vector<8x128xf32>
    %c0_5 = arith.constant 0 : index
    %c128_6 = arith.constant 128 : index
    %11 = vector.load %arg3[%c0_5, %c128_6] : memref<8x256xf32, #tpu.memory_space<vmem>>, vector<8x128xf32>
    %12 = arith.mulf %10, %11 : vector<8x128xf32>
    %13 = arith.addf %10, %11 : vector<8x128xf32>
    %14 = arith.addf %8, %12 : vector<8x128xf32>
    %15 = arith.addf %9, %13 : vector<8x128xf32>
    %c0_7 = arith.constant 0 : index
    %c0_8 = arith.constant 0 : index
    %c0_9 = arith.constant 0 : index
    %16 = vector.load %arg4[%c0_7, %c0_8, %c0_9] : memref<1x8x128xf32, #tpu.memory_space<vmem>>, vector<1x8x128xf32>
    %17 = vector.shape_cast %16 : vector<1x8x128xf32> to vector<8x128xf32>
    %18 = arith.addf %17, %14 : vector<8x128xf32>
    %c0_10 = arith.constant 0 : index
    %c0_11 = arith.constant 0 : index
    %c0_12 = arith.constant 0 : index
    %19 = vector.load %arg4[%c0_10, %c0_11, %c0_12] : memref<1x8x128xf32, #tpu.memory_space<vmem>>, vector<1x8x128xf32>
    %20 = vector.shape_cast %19 : vector<1x8x128xf32> to vector<8x128xf32>
    %21 = vector.shape_cast %18 : vector<8x128xf32> to vector<1x8x128xf32>
    tpu.vector_store %arg4[%c0_10, %c0_11, %c0_12], %21 {strides = array<i32>} : memref<1x8x128xf32, #tpu.memory_space<vmem>>, vector<1x8x128xf32>,
    %c0_13 = arith.constant 0 : index
    %c0_14 = arith.constant 0 : index
    %c0_15 = arith.constant 0 : index
    %22 = vector.load %arg5[%c0_13, %c0_14, %c0_15] : memref<1x8x128xf32, #tpu.memory_space<vmem>>, vector<1x8x128xf32>
    %23 = vector.shape_cast %22 : vector<1x8x128xf32> to vector<8x128xf32>
    %24 = arith.addf %23, %15 : vector<8x128xf32>
    %c0_16 = arith.constant 0 : index
    %c0_17 = arith.constant 0 : index
    %c0_18 = arith.constant 0 : index
    %25 = vector.load %arg5[%c0_16, %c0_17, %c0_18] : memref<1x8x128xf32, #tpu.memory_space<vmem>>, vector<1x8x128xf32>
    %26 = vector.shape_cast %25 : vector<1x8x128xf32> to vector<8x128xf32>
    %27 = vector.shape_cast %24 : vector<8x128xf32> to vector<1x8x128xf32>
    tpu.vector_store %arg5[%c0_16, %c0_17, %c0_18], %27 {strides = array<i32>} : memref<1x8x128xf32, #tpu.memory_space<vmem>>, vector<1x8x128xf32>,
    return
  }
  func.func @transform_0(%arg0: i32, %arg1: i32) -> (i32, i32) {
    %c1_i32 = arith.constant 1 : i32
    %0 = arith.muli %arg0, %c1_i32 : i32
    %1 = arith.addi %0, %arg1 : i32
    %c0_i32 = arith.constant 0 : i32
    %c0_i32_0 = arith.constant 0 : i32
    return %c0_i32, %1 : i32, i32
  }
  func.func @transform_1(%arg0: i32, %arg1: i32) -> (i32, i32) {
    %c1_i32 = arith.constant 1 : i32
    %0 = arith.muli %arg0, %c1_i32 : i32
    %1 = arith.addi %0, %arg1 : i32
    %c0_i32 = arith.constant 0 : i32
    %c0_i32_0 = arith.constant 0 : i32
    return %c0_i32, %1 : i32, i32
  }
  func.func @transform_2(%arg0: i32, %arg1: i32) -> (i32, i32, i32) {
    %c0_i32 = arith.constant 0 : i32
    %c0_i32_0 = arith.constant 0 : i32
    %c0_i32_1 = arith.constant 0 : i32
    return %arg0, %c0_i32, %c0_i32_0 : i32, i32, i32
  }
  func.func @transform_3(%arg0: i32, %arg1: i32) -> (i32, i32, i32) {
    %c0_i32 = arith.constant 0 : i32
    %c0_i32_0 = arith.constant 0 : i32
    %c0_i32_1 = arith.constant 0 : i32
    return %arg0, %c0_i32, %c0_i32_0 : i32, i32, i32
  }
}

</mosaic_0001>

<bundles_post_ra>
// kernel: tpu_custom_call.1
= control target key start
LH: loop header
LB: loop body
LE: loop exit
PB: predicated region body
PF: predicated region fallthrough
CT: control target
= control target key end

     0   :  { %9 = vsyncpa [#allocation3], 0  ;;  %s234_s0 = inlined_call_operand.hbm [shape: f32[8,256], index: 0, kind: input, shape index: {}]   ;;  %s235_s1 = inlined_call_operand.hbm [shape: f32[8,256], index: 1, kind: input, shape index: {}]   ;;  %s236_s2 = inlined_call_operand.hbm [shape: f32[1,8,128], index: 2, kind: output, shape index: {0}]   ;;  %s237_s3 = inlined_call_operand.hbm [shape: f32[1,8,128], index: 3, kind: output, shape index: {1}]  }
   0x1   :  { %10 = vsyncpa [#allocation6], 0 }
   0x2   :  { %11 = vsyncpa [#allocation4], 0 }
   0x3   :  { %12 = vsyncpa [#allocation9], 0  ;;  %s198_s12 = smov [#allocation2]   ;;  %s199_s14 = smov [#allocation5]  }
   0x4   :  { %s23_s13 = sshll.u32 %s198_s12, 4  ;;  %s37_s15 = sshll.u32 %s199_s14, 4  ;;  %s24_s13 = int_to_ptr.vmem [resolvable:$true] %s23_s13  ;;  %s38_s15 = int_to_ptr.vmem [resolvable:$true] %s37_s15 }
   0x5   :  { %s118_s16 = scalar_lea.vmem %s24_s13, 256  ;;  %p123_p1 = scmp.lt.s32.totalorder %s24_s13, %s24_s13 }
   0x6   :  { %p119_p0 = scmp.ne.s32.totalorder %s24_s13, %s118_s16  ;;  %p124_p2 = scmp.lt.s32.totalorder %s118_s16, %s118_s16 }
   0x8   :  { %p125_p3 = por %p124_p2, %p123_p1 }
   0xa   :  { %p126_p4 = pnand %p125_p3, %p119_p0 }
   0xc   :  { %129 = shalt.err (!%p126_p4)
}
   0xd   :  { %26 = dma.hbm_to_vmem [thread:$0]  %s234_s0, 256, %s24_s13, [#allocation3]  }
   0xe   :  { %s138_s19 = scalar_lea.vmem %s38_s15, 256  ;;  %p143_p6 = scmp.lt.s32.totalorder %s38_s15, %s38_s15 }
   0xf   :  { %p139_p5 = scmp.ne.s32.totalorder %s38_s15, %s138_s19  ;;  %p144_p7 = scmp.lt.s32.totalorder %s138_s19, %s138_s19 }
  0x11   :  { %p145_p8 = por %p144_p7, %p143_p6 }
  0x13   :  { %p146_p9 = pnand %p145_p8, %p139_p5 }
  0x15   :  { %149 = shalt.err (!%p146_p9)
}
  0x16   :  { %40 = dma.hbm_to_vmem [thread:$0]  %s235_s1, 256, %s38_s15, [#allocation6]  }
  0x17   :  { %190 = dma.done.wait [#allocation3], 256  }
  0x18   :  { %191 = vsyncadd [#allocation3], 4294967040 }
  0x19   :  { %192 = dma.done.wait [#allocation6], 256  }
  0x1a   :  { %193 = vsyncadd [#allocation6], 4294967040  ;;  %v57_v0 = vld [vmem:[#allocation2] sm:$0xff]  ;;  %v58_v1 = vld [vmem:[#allocation5] sm:$0xff]  ;;  %s200_s0 = smov [#allocation7]   ;;  %s201_s23 = smov [#allocation8]  }
  0x1b   :  { %v63_v2 = vld [vmem:[#allocation2 + $0x8] sm:$0xff]  ;;  %v59_v3 = vmul.f32 %v58_v1, %v57_v0  ;;  %v64_v4 = vld [vmem:[#allocation5 + $0x8] sm:$0xff]  ;;  %v60_v5 = vadd.f32 %v58_v1, %v57_v0  ;;  %s81_s22 = sshll.u32 %s200_s0, 4  ;;  %s91_s24 = sshll.u32 %s201_s23, 4  ;;  %s82_s22 = int_to_ptr.vmem [resolvable:$true] %s81_s22  ;;  %s92_s24 = int_to_ptr.vmem [resolvable:$true] %s91_s24 }
  0x1c   :  { %v65_v6 = vmul.f32 %v64_v4, %v63_v2  ;;  %v66_v7 = vadd.f32 %v64_v4, %v63_v2  ;;  %s150_s1 = scalar_lea.vmem %s82_s22, 128  ;;  %p155_p11 = scmp.lt.s32.totalorder %s82_s22, %s82_s22 }
  0x1d   :  { %p151_p10 = scmp.ne.s32.totalorder %s82_s22, %s150_s1  ;;  %p156_p12 = scmp.lt.s32.totalorder %s150_s1, %s150_s1 }
  0x1e   :  { %v67_v8 = vadd.f32 %v65_v6, %v59_v3  ;;  %v68_v9 = vadd.f32 %v66_v7, %v60_v5 }
  0x1f   :  { %p157_p13 = por %p156_p12, %p155_p11 }
  0x20   :  { %71 = vst [vmem:[#allocation7] sm:$0xff] %v67_v8  ;;  %74 = vst [vmem:[#allocation8] sm:$0xff] %v68_v9 }
  0x21   :  { %p158_p0 = pnand %p157_p13, %p151_p10 }
  0x23   :  { %161 = shalt.err (!%p158_p0)
}
  0x24   :  { %84 = dma.vmem_to_hbm [thread:$0]  %s82_s22, 128, %s236_s2, [#allocation4]  }
  0x25   :  { %s170_s27 = scalar_lea.vmem %s92_s24, 128  ;;  %p175_p2 = scmp.lt.s32.totalorder %s92_s24, %s92_s24 }
  0x26   :  { %p171_p1 = scmp.ne.s32.totalorder %s92_s24, %s170_s27  ;;  %p176_p3 = scmp.lt.s32.totalorder %s170_s27, %s170_s27 }
  0x28   :  { %p177_p4 = por %p176_p3, %p175_p2 }
  0x2a   :  { %p178_p5 = pnand %p177_p4, %p171_p1 }
  0x2c   :  { %181 = shalt.err (!%p178_p5)
}
  0x2d   :  { %94 = dma.vmem_to_hbm [thread:$0]  %s92_s24, 128, %s237_s3, [#allocation9]  }
  0x2e   :  { %194 = dma.done.wait [#allocation4], 128  }
  0x2f   :  { %195 = vsyncadd [#allocation4], 4294967168 }
  0x30   :  { %196 = dma.done.wait [#allocation9], 128  }
  0x31   :  { %197 = vsyncadd [#allocation9], 4294967168 }
  0x32   :  { %101 = vsyncpa [#allocation3], 1 }
  0x33   :  { %102 = vsyncpa [#allocation6], 1 }
  0x34   :  { %103 = vsyncpa [#allocation4], 1 }
  0x35   :  { %104 = vsyncpa [#allocation9], 1 }

</bundles_post_ra>
